<compile_context>
chip_gen: v7x
topology: tpu7x:2x2x1
jax: 0.10.0
libtpu: 0.0.40
codegen_flags: <defaults>
</compile_context>

<pallas_src>
import jax
import jax.numpy as jnp
from jax.experimental import pallas as pl
from jax.experimental.pallas import tpu as pltpu

SLICE_LEN = 20                     # the [:, 0:20] slice in the PyTorch module
_XLA_FALLBACK_BYTES = 1 << 20      # below this, pallas launch overhead > XLA concat


def _tail_split(c1, c2, c3):
    """Columns of the (clamped) 20-col tail contributed by each input."""
    t1 = min(SLICE_LEN, c1)
    t2 = min(SLICE_LEN - t1, c2)
    t3 = min(SLICE_LEN - t1 - t2, c3)
    return t1, t2, t3


def _make_kernel(c1, c2, c3, direct_stores):
    """Kernel specialized to static input widths."""
    c_total = c1 + c2 + c3
    t1, t2, t3 = _tail_split(c1, c2, c3)

    if direct_stores:
        # Every column boundary is a multiple of 128 lanes -> the per-input
        # slice stores are unmasked and optimal.  Keep them separate.
        def kernel(x1_ref, x2_ref, x3_ref, o_ref):
            o_ref[:, 0:c1] = x1_ref[...]
            o_ref[:, c1:c1 + c2] = x2_ref[...]
            o_ref[:, c1 + c2:c_total] = x3_ref[...]
            off = c_total
            if t1 > 0:
                o_ref[:, off:off + t1] = x1_ref[:, 0:t1]
                off += t1
            if t2 > 0:
                o_ref[:, off:off + t2] = x2_ref[:, 0:t2]
                off += t2
            if t3 > 0:
                o_ref[:, off:off + t3] = x3_ref[:, 0:t3]
    else:
        # Misaligned boundaries would lower each slice store to lane rotations
        # + masked vst.msk read-modify-writes.  Build the full output row tile
        # once (lane-concat in-register) and issue a single dense store.
        def kernel(x1_ref, x2_ref, x3_ref, o_ref):
            x1 = x1_ref[...]
            x2 = x2_ref[...]
            x3 = x3_ref[...]
            parts = [x1, x2, x3]
            if t1 > 0:
                parts.append(x1[:, 0:t1])
            if t2 > 0:
                parts.append(x2[:, 0:t2])
            if t3 > 0:
                parts.append(x3[:, 0:t3])
            o_ref[...] = jnp.concatenate(parts, axis=1)

    return kernel


def _reference(x1, x2, x3):
    dtype = jnp.result_type(x1.dtype, x2.dtype, x3.dtype)
    v1 = jnp.concatenate(
        [x1.astype(dtype), x2.astype(dtype), x3.astype(dtype)], axis=1
    )
    v3 = v1[:, :SLICE_LEN]           # clamps exactly like torch
    return jnp.concatenate([v1, v3], axis=1)


def _vmem_capacity_bytes():
    try:
        return int(pltpu.get_tpu_info().vmem_capacity_bytes)
    except Exception:
        return 64 * 1024 * 1024      # conservative default (v7x per-TC)


def model_forward(x1, x2, x3, *, tile_rows=None, force_pallas=False):
    assert x1.ndim == 2 and x2.ndim == 2 and x3.ndim == 2, "expect 2D (batch, features)"
    n = x1.shape[0]
    assert x2.shape[0] == n and x3.shape[0] == n, "batch dims must match"

    c1, c2, c3 = x1.shape[1], x2.shape[1], x3.shape[1]
    c_in = c1 + c2 + c3
    t1, t2, t3 = _tail_split(c1, c2, c3)
    c_out = c_in + t1 + t2 + t3

    # torch.cat promotes mixed dtypes; reconcile explicitly in the wrapper.
    dtype = jnp.result_type(x1.dtype, x2.dtype, x3.dtype)
    x1 = x1.astype(dtype)
    x2 = x2.astype(dtype)
    x3 = x3.astype(dtype)
    itemsize = jnp.dtype(dtype).itemsize

    # Sub-32-bit dtypes pack multiple rows per sublane; respect the packing.
    sublane = max(8, 32 // itemsize)

    # Per-generation VMEM budget for the double-buffered (in + out) working set.
    vmem_cap = _vmem_capacity_bytes()
    budget = min(max(vmem_cap // 4, 8 * 1024 * 1024), 24 * 1024 * 1024)
    row_bytes = 2 * (c_in + c_out) * itemsize     # in + out, x2 for double buffering
    total_bytes = n * (c_in + c_out) * itemsize

    if not force_pallas:
        # Tiny problems: launch + per-step overhead dominates; XLA concat wins.
        if total_bytes < _XLA_FALLBACK_BYTES:
            return _reference(x1, x2, x3)
        # Extremely wide feature dims: even a sublane-high tile blows the budget.
        # TODO(synk): add a column-tiled grid axis for this regime instead of XLA.
        if row_bytes * sublane > budget:
            return _reference(x1, x2, x3)

    if tile_rows is None:
        tile_rows = max(sublane, (budget // row_bytes) // sublane * sublane)
        if tile_rows >= n:
            if n >= 2 * sublane:
                # Keep >= 2 grid steps so the "parallel" axis can shard across
                # both TensorCores on v7x (negligible cost on 1-TC chips).
                half = -(-n // 2)
                tile_rows = -(-half // sublane) * sublane
            else:
                tile_rows = n   # single full-height block ((8,128) rule: full dim)
    tile_rows = min(tile_rows, n)

    grid = (pl.cdiv(n, tile_rows),)

    # Unmasked direct slice stores only when all column offsets are 128-aligned.
    direct = (c1 % 128 == 0) and ((c1 + c2) % 128 == 0) and (c_in % 128 == 0)
    kernel = _make_kernel(c1, c2, c3, direct_stores=direct)

    # Size scoped VMEM to the double-buffered working set + headroom for Mosaic
    # internal scratch; keeps roofline-sized tiles on v5e's 16 MiB default.
    working_set = 2 * tile_rows * (c_in + c_out) * itemsize
    vmem_limit = min(working_set + 4 * 1024 * 1024,
                     max(vmem_cap - 8 * 1024 * 1024, 16 * 1024 * 1024))
    vmem_limit = max(vmem_limit, 16 * 1024 * 1024)

    # Pure copy op: advise XLA it is memory-bound with zero FLOPs.
    cost = pl.CostEstimate(flops=0, transcendentals=0, bytes_accessed=total_bytes)

    return pl.pallas_call(
        kernel,
        out_shape=jax.ShapeDtypeStruct((n, c_out), dtype),
        grid=grid,
        in_specs=[
            pl.BlockSpec((tile_rows, c1), lambda i: (i, 0)),
            pl.BlockSpec((tile_rows, c2), lambda i: (i, 0)),
            pl.BlockSpec((tile_rows, c3), lambda i: (i, 0)),
        ],
        out_specs=pl.BlockSpec((tile_rows, c_out), lambda i: (i, 0)),
        compiler_params=pltpu.CompilerParams(
            dimension_semantics=("parallel",),
            vmem_limit_bytes=int(vmem_limit),
        ),
        cost_estimate=cost,
    )(x1, x2, x3)


if __name__ == "__main__":
    key = jax.random.PRNGKey(0)
    k1, k2, k3 = jax.random.split(key, 3)

    # Case 1: small shapes, force the Pallas path (misaligned -> concat kernel).
    x1 = jax.random.normal(k1, (2, 16), dtype=jnp.float32)
    x2 = jax.random.normal(k2, (2, 16), dtype=jnp.float32)
    x3 = jax.random.normal(k3, (2, 16), dtype=jnp.float32)
    out = jax.block_until_ready(model_forward(x1, x2, x3, force_pallas=True))
    ref = _reference(x1, x2, x3)
    assert out.shape == (2, 68), out.shape
    assert jnp.array_equal(out, ref), "case 1 mismatch vs reference"

    # Case 2: 128-aligned widths -> direct-store kernel, >=2 grid steps.
    y1 = jax.random.normal(k1, (32, 128), dtype=jnp.float32)
    y2 = jax.random.normal(k2, (32, 128), dtype=jnp.float32)
    y3 = jax.random.normal(k3, (32, 256), dtype=jnp.float32)
    out2 = jax.block_until_ready(model_forward(y1, y2, y3, force_pallas=True))
    assert out2.shape == (32, 512 + SLICE_LEN), out2.shape
    assert jnp.array_equal(out2, _reference(y1, y2, y3)), "case 2 mismatch"

    # Case 3: concatenated width < 20 (torch clamps the slice) + mixed dtypes.
    z1 = jax.random.normal(k1, (4, 4), dtype=jnp.bfloat16)
    z2 = jax.random.normal(k2, (4, 3), dtype=jnp.float32)
    z3 = jax.random.normal(k3, (4, 5), dtype=jnp.float32)
    out3 = jax.block_until_ready(model_forward(z1, z2, z3, force_pallas=True))
    assert out3.shape == (4, 24), out3.shape
    assert jnp.array_equal(out3, _reference(z1, z2, z3)), "case 3 mismatch"

    # Case 4: default path for tiny shapes (XLA fast-path) must also match.
    out4 = jax.block_until_ready(model_forward(x1, x2, x3))
    assert jnp.array_equal(out4, ref), "case 4 mismatch"

    print("KERNEL_OK")
</pallas_src>

<mosaic_0001>
module attributes {stable_mosaic.version = 11 : i64} {
  func.func @kernel(%arg0: i32, %arg1: memref<2x16xf32, #tpu.memory_space<vmem>>, %arg2: memref<2x16xf32, #tpu.memory_space<vmem>>, %arg3: memref<2x16xf32, #tpu.memory_space<vmem>>, %arg4: memref<2x68xf32, #tpu.memory_space<vmem>>) attributes {dimension_semantics = [#tpu.dimension_semantics<parallel>], iteration_bounds = array<i64: 1>, scalar_prefetch = 0 : i64, scratch_operands = 0 : i64, tpu.core_type = #tpu.core_type<tc>, window_params = [{transform_indices = @transform_0, window_bounds = array<i64: 2, 16>}, {transform_indices = @transform_1, window_bounds = array<i64: 2, 16>}, {transform_indices = @transform_2, window_bounds = array<i64: 2, 16>}, {transform_indices = @transform_3, window_bounds = array<i64: 2, 68>}]} {
    %c0 = arith.constant 0 : index
    %c0_0 = arith.constant 0 : index
    %0 = vector.load %arg1[%c0, %c0_0] : memref<2x16xf32, #tpu.memory_space<vmem>>, vector<2x16xf32>
    %c0_1 = arith.constant 0 : index
    %c0_2 = arith.constant 0 : index
    %1 = vector.load %arg2[%c0_1, %c0_2] : memref<2x16xf32, #tpu.memory_space<vmem>>, vector<2x16xf32>
    %c0_3 = arith.constant 0 : index
    %c0_4 = arith.constant 0 : index
    %2 = vector.load %arg3[%c0_3, %c0_4] : memref<2x16xf32, #tpu.memory_space<vmem>>, vector<2x16xf32>
    %3 = vector.extract_strided_slice %1 {offsets = [0, 0], sizes = [2, 4], strides = [1, 1]} : vector<2x16xf32> to vector<2x4xf32>
    %4 = tpu.concatenate %0, %1, %2, %0, %3 in 1 : vector<2x16xf32>, vector<2x16xf32>, vector<2x16xf32>, vector<2x16xf32>, vector<2x4xf32> -> vector<2x68xf32>
    %c0_5 = arith.constant 0 : index
    %c0_6 = arith.constant 0 : index
    %5 = vector.load %arg4[%c0_5, %c0_6] : memref<2x68xf32, #tpu.memory_space<vmem>>, vector<2x68xf32>
    tpu.vector_store %arg4[%c0_5, %c0_6], %4 {strides = array<i32>} : memref<2x68xf32, #tpu.memory_space<vmem>>, vector<2x68xf32>,
    return
  }
  func.func @transform_0(%arg0: i32) -> (i32, i32) {
    %c0_i32 = arith.constant 0 : i32
    %c0_i32_0 = arith.constant 0 : i32
    return %arg0, %c0_i32 : i32, i32
  }
  func.func @transform_1(%arg0: i32) -> (i32, i32) {
    %c0_i32 = arith.constant 0 : i32
    %c0_i32_0 = arith.constant 0 : i32
    return %arg0, %c0_i32 : i32, i32
  }
  func.func @transform_2(%arg0: i32) -> (i32, i32) {
    %c0_i32 = arith.constant 0 : i32
    %c0_i32_0 = arith.constant 0 : i32
    return %arg0, %c0_i32 : i32, i32
  }
  func.func @transform_3(%arg0: i32) -> (i32, i32) {
    %c0_i32 = arith.constant 0 : i32
    %c0_i32_0 = arith.constant 0 : i32
    return %arg0, %c0_i32 : i32, i32
  }
}

</mosaic_0001>

<bundles_post_ra>
// kernel: tpu_custom_call.1
= control target key start
LH: loop header
LB: loop body
LE: loop exit
PB: predicated region body
PF: predicated region fallthrough
CT: control target
= control target key end

     0   :  { %8 = vsyncpa [#allocation3], 0  ;;  %s180_s0 = inlined_call_operand.hbm [shape: f32[2,16], index: 0, kind: input, shape index: {}]   ;;  %s181_s1 = inlined_call_operand.vmem [shape: f32[2,16], index: 1, kind: input, shape index: {}]   ;;  %s182_s2 = inlined_call_operand.vmem [shape: f32[2,16], index: 2, kind: input, shape index: {}]   ;;  %s183_s3 = inlined_call_operand.hbm [shape: f32[2,68], index: 3, kind: output, shape index: {}]  }
   0x1   :  { %9 = vsyncpa [#allocation4], 0  ;;  %s124_s12 = smov [#allocation2]   ;;  %s76_s16 = scalar_lea.hbm %s180_s0, 32 }
   0x2   :  { %s16_s13 = sshll.u32 %s124_s12, 4  ;;  %p77_p0 = scmp.ne.s32.totalorder %s180_s0, %s76_s16  ;;  %s17_s13 = int_to_ptr.vmem [resolvable:$true] %s16_s13 }
   0x3   :  { %p80_p1 = scmp.lt.u32.totalorder %s76_s16, %s180_s0 }
   0x5   :  { %p82_p2 = pnand %p80_p1, %p77_p0 }
   0x7   :  { %85 = shalt.err (!%p82_p2)
}
   0x8   :  { %s86_s21 = scalar_lea.vmem %s17_s13, 32  ;;  %p91_p4 = scmp.lt.s32.totalorder %s17_s13, %s17_s13 }
   0x9   :  { %p87_p3 = scmp.ne.s32.totalorder %s17_s13, %s86_s21  ;;  %p92_p5 = scmp.lt.s32.totalorder %s86_s21, %s86_s21 }
   0xb   :  { %p93_p6 = por %p92_p5, %p91_p4 }
   0xd   :  { %p94_p7 = pnand %p93_p6, %p87_p3 }
   0xf   :  { %97 = shalt.err (!%p94_p7)
}
  0x10   :  { %19 = dma.hbm_to_vmem [thread:$0]  %s180_s0, 32, %s17_s13, [#allocation3]  }
  0x11   :  { %120 = dma.done.wait [#allocation3], 32  }
  0x12   :  { %121 = vsyncadd [#allocation3], 4294967264  ;;  %v28_v0 = vld [vmem:[%s181_s1] sm:$0x3]  ;;  %s125_s26 = smov 16   ;;  %s126_s27 = smov 48  }
  0x13   :  { %v27_v1 = vld [vmem:[#allocation2] sm:$0x3]  ;;  %31 = vrot.lane.b32.xlu0 %v28_v0, %s125_s26  ;;  %s127_s30 = smov 32   ;;  %s128_s4 = smov 64   ;;  %vm45_vm0 = vcmask 130048   ;;  %vm47_vm1 = vcmask 261120  }
  0x14   :  { %39 = vrot.lane.b32.xlu1 %v27_v1, %s126_s27  ;;  %v29_v2 = vld [vmem:[%s182_s2] sm:$0x3]  ;;  %vm49_vm2 = vcmask 392192   ;;  %s129_s0 = smov [#allocation5]   ;;  %vm51_vm3 = vcmask 523264   ;;  %vm53_vm4 = vcmask 549888  }
  0x15   :  { %s61_s1 = sshll.u32 %s129_s0, 4  ;;  %s62_s1 = int_to_ptr.vmem [resolvable:$true] %s61_s1 }
  0x16   :  { %s98_s2 = scalar_lea.vmem %s62_s1, 32  ;;  %p103_p9 = scmp.lt.s32.totalorder %s62_s1, %s62_s1 }
  0x17   :  { %35 = vrot.lane.b32.xlu0 %v29_v2, %s127_s30  ;;  %p99_p8 = scmp.ne.s32.totalorder %s62_s1, %s98_s2  ;;  %p104_p10 = scmp.lt.s32.totalorder %s98_s2, %s98_s2 }
  0x18   :  { %42 = vrot.lane.b32.xlu1 %v28_v0, %s128_s4 }
  0x19   :  { %p105_p11 = por %p104_p10, %p103_p9 }
  0x1b   :  { %p106_p12 = pnand %p105_p11, %p99_p8 }
  0x85   :  { %v32_v3 = vpop.permute.xlu0 %31 }
  0x86   :  { %v40_v4 = vpop.permute.xlu1 %39  ;;  %v46_v5 = vsel %vm45_vm0, %v27_v1, %v32_v3 }
  0x89   :  { %v36_v6 = vpop.permute.xlu0 %35 }
  0x8a   :  { %v43_v7 = vpop.permute.xlu1 %42  ;;  %v48_v8 = vsel %vm47_vm1, %v46_v5, %v36_v6 }
  0x8b   :  { %v50_v9 = vsel %vm49_vm2, %v48_v8, %v40_v4 }
  0x8c   :  { %v52_v10 = vsel %vm51_vm3, %v50_v9, %v43_v7 }
  0x8d   :  { %54 = vst.msk [vmem:[#allocation5] sm:$0x3] %vm53_vm4, %v52_v10 }
  0x8e   :  { %109 = shalt.err (!%p106_p12)
}
  0x8f   :  { %s110_s7 = scalar_lea.hbm %s183_s3, 32 }
  0x90   :  { %p111_p13 = scmp.ne.s32.totalorder %s183_s3, %s110_s7  ;;  %p114_p0 = scmp.lt.u32.totalorder %s110_s7, %s183_s3 }
  0x92   :  { %p116_p1 = pnand %p114_p0, %p111_p13 }
  0x94   :  { %119 = shalt.err (!%p116_p1)
}
  0x95   :  { %64 = dma.vmem_to_hbm [thread:$0]  %s62_s1, 32, %s183_s3, [#allocation4]  }
  0x96   :  { %122 = dma.done.wait [#allocation4], 32  }
  0x97   :  { %123 = vsyncadd [#allocation4], 4294967264 }
  0x98   :  { %68 = vsyncpa [#allocation3], 1 }
  0x99   :  { %69 = vsyncpa [#allocation4], 1 }

</bundles_post_ra>
